<compile_context>
chip_gen: v7x
topology: tpu7x:2x2x1
jax: 0.10.0
libtpu: 0.0.40
codegen_flags: <defaults>
</compile_context>

<pallas_src>
import functools

import jax
import jax.numpy as jnp
from jax.experimental import pallas as pl
from jax.experimental.pallas import tpu as pltpu


# -------------------------------------------------------------- utilities --

def _round_up(x, m):
    return ((x + m - 1) // m) * m


def _largest_divisor_leq(n, cap):
    """Largest d with d | n and d <= cap (n >= 1, cap >= 1)."""
    d = max(1, min(n, cap))
    while n % d:
        d -= 1
    return d


def _vmem_capacity_bytes():
    try:
        info = pltpu.get_tpu_info()
        cap = getattr(info, "vmem_capacity_bytes", None)
        if cap:
            return int(cap)
    except Exception:
        pass
    return 128 * 1024 * 1024          # v5e / v6e default


# ------------------------------------------------------------- fused path --

def _fused_kernel(inv_hw, x_ref, w1t_ref, b1_ref, w2t_ref, b2_ref, o_ref):
    """pool -> fc1 -> relu -> fc2 -> sigmoid -> scale, on a resident slab."""
    x = x_ref[...]                                               # (nb, C, HW)
    pooled = jnp.sum(x.astype(jnp.float32), axis=-1) * inv_hw    # (nb, C)
    h = jnp.dot(pooled, w1t_ref[...], preferred_element_type=jnp.float32)
    h = jnp.maximum(h + b1_ref[...], 0.0)                        # (nb, mid)
    s = jnp.dot(h, w2t_ref[...], preferred_element_type=jnp.float32)
    s = jax.nn.sigmoid(s + b2_ref[...])                          # (nb, C)
    # cast s once; for bf16 inputs the multiply stays in bf16 (v6e/v7x VALU).
    o_ref[...] = (x * s[:, :, None].astype(x.dtype)).astype(o_ref.dtype)


# --------------------------------------------------- fallback 3-phase path --

def _pool_mean_kernel(inv_hw, x_ref, o_ref):
    """Mean over the tiled HW axis; per-step lane reduce accumulated into the
    resident (row_tile, 1) output block (no full-width scratch)."""
    j = pl.program_id(1)
    part = jnp.sum(x_ref[...].astype(jnp.float32), axis=-1, keepdims=True)

    @pl.when(j == 0)
    def _():
        o_ref[...] = part

    @pl.when(j > 0)
    def _():
        o_ref[...] += part

    @pl.when(j == pl.num_programs(1) - 1)
    def _():
        o_ref[...] = o_ref[...] * inv_hw        # fold 1/HW into the last write


def _excite_kernel(p_ref, w1t_ref, b1_ref, w2t_ref, b2_ref, s_ref):
    """s = sigmoid(relu(pooled @ W1^T + b1) @ W2^T + b2), whole batch at once."""
    h = jnp.dot(p_ref[...], w1t_ref[...], preferred_element_type=jnp.float32)
    h = jnp.maximum(h + b1_ref[...], 0.0)
    s = jnp.dot(h, w2t_ref[...], preferred_element_type=jnp.float32)
    s_ref[...] = jax.nn.sigmoid(s + b2_ref[...]).astype(s_ref.dtype)


def _scale_kernel(x_ref, s_ref, o_ref):
    """out = x * s  (s is (rows, 1), broadcast over the lane/HW axis)."""
    o_ref[...] = (x_ref[...] * s_ref[...].astype(x_ref.dtype)).astype(o_ref.dtype)


# ----------------------------------------------------------------- wrapper --

def se_module(x, w1, b1, w2, b2):
    """SE forward.  x: (N, C, H, W); w1: (mid, C); b1: (mid,); w2: (C, mid); b2: (C,)."""
    N, C, H, W = x.shape
    mid = w1.shape[0]
    HW = H * W
    rows = N * C
    itemsize = x.dtype.itemsize
    inv_hw = 1.0 / float(HW)

    vmem_cap = _vmem_capacity_bytes()
    # working limit: ~48 MiB on v7x (64 MiB physical), 96 MiB on v5e/v6e (128 MiB).
    vmem_limit = min((vmem_cap * 3) // 4, 96 * 1024 * 1024)

    w1t = w1.T                      # (C, mid)
    w2t = w2.T                      # (mid, C)
    b1r = b1.reshape(1, mid)
    b2r = b2.reshape(1, C)

    # ---------------------------------------------------------- fused path --
    slab_bytes = C * HW * itemsize                     # one batch element, in or out
    weight_bytes = (w1t.size + w2t.size + b1r.size + b2r.size) * w1.dtype.itemsize
    fuse_budget = vmem_limit - weight_bytes - (1 << 20)        # headroom
    max_nb = fuse_budget // max(1, 4 * slab_bytes)     # 2 in-bufs + 2 out-bufs
    if max_nb >= 1:
        nb_cap = int(max_nb)
        if N >= 4:                                     # >=4 steps: megacore + pipelining
            nb_cap = min(nb_cap, N // 4)
        elif N >= 2:                                   # >=2 steps: both v7x TCs busy
            nb_cap = min(nb_cap, N // 2)
        nb = _largest_divisor_leq(N, max(1, nb_cap))

        x3 = x.reshape(N, C, HW)                       # free, contiguous
        out3 = pl.pallas_call(
            functools.partial(_fused_kernel, inv_hw),
            out_shape=jax.ShapeDtypeStruct((N, C, HW), x.dtype),
            grid_spec=pltpu.PrefetchScalarGridSpec(
                num_scalar_prefetch=0,
                grid=(N // nb,),
                in_specs=[
                    pl.BlockSpec((nb, C, HW), lambda i: (i, 0, 0)),
                    pl.BlockSpec((C, mid), lambda i: (0, 0)),
                    pl.BlockSpec((1, mid), lambda i: (0, 0)),
                    pl.BlockSpec((mid, C), lambda i: (0, 0)),
                    pl.BlockSpec((1, C), lambda i: (0, 0)),
                ],
                out_specs=pl.BlockSpec((nb, C, HW), lambda i: (i, 0, 0)),
            ),
            compiler_params=pltpu.CompilerParams(
                dimension_semantics=("parallel",),
                vmem_limit_bytes=vmem_limit,
            ),
        )(x3, w1t, b1r, w2t, b2r)
        return out3.reshape(N, C, H, W)

    # ------------------------------------------------------- fallback path --
    # Alignment-only padding: HW -> multiple of 128, rows -> sublane-pack unit.
    sub = max(8, 32 // itemsize)                 # 8 f32 / 16 bf16 / 32 int8
    rows_al = _round_up(rows, sub)
    hw_al = _round_up(HW, 128)

    # Tile sizing: ~6-8 MiB x tiles; tiles divide the aligned extents exactly.
    tile_bytes = min(8 * 1024 * 1024, vmem_limit // 8)
    hw_tile = 128 * _largest_divisor_leq(hw_al // 128, max(1, 4096 // 128))
    row_units = rows_al // sub
    row_cap_units = max(1, tile_bytes // (hw_tile * itemsize * sub))
    if row_units >= 2:                           # keep >=2 parallel row steps (v7x)
        row_cap_units = min(row_cap_units, max(1, row_units // 2))
    row_tile = sub * _largest_divisor_leq(row_units, row_cap_units)

    grid_rows = rows_al // row_tile
    grid_hw = hw_al // hw_tile

    x2d = x.reshape(rows, HW)
    padded = (rows_al, hw_al) != (rows, HW)
    if padded:
        # TODO(synk): mask the ragged last HW tile in-kernel to drop this copy.
        x2d = jnp.pad(x2d, ((0, rows_al - rows), (0, hw_al - HW)))

    cparams_pool = pltpu.CompilerParams(
        dimension_semantics=("parallel", "arbitrary"),
        vmem_limit_bytes=vmem_limit,
    )
    cparams_scale = pltpu.CompilerParams(
        dimension_semantics=("parallel", "parallel"),
        vmem_limit_bytes=vmem_limit,
    )

    # phase 1: global average pool (mean, scaling folded into last write)
    pooled = pl.pallas_call(
        functools.partial(_pool_mean_kernel, inv_hw),
        out_shape=jax.ShapeDtypeStruct((rows_al, 1), jnp.float32),
        grid_spec=pltpu.PrefetchScalarGridSpec(
            num_scalar_prefetch=0,
            grid=(grid_rows, grid_hw),
            in_specs=[pl.BlockSpec((row_tile, hw_tile), lambda i, j: (i, j))],
            out_specs=pl.BlockSpec((row_tile, 1), lambda i, j: (i, 0)),
        ),
        compiler_params=cparams_pool,
    )(x2d)

    pooled_nc = pooled[:rows, 0].reshape(N, C)

    # phase 2: excitation (tiny, off the HBM critical path)
    s = pl.pallas_call(
        _excite_kernel,
        out_shape=jax.ShapeDtypeStruct((N, C), jnp.float32),
    )(pooled_nc, w1t, b1r, w2t, b2r)

    # phase 3: per-channel elementwise scale
    s_col = s.reshape(rows, 1)
    if rows_al != rows:
        s_col = jnp.pad(s_col, ((0, rows_al - rows), (0, 0)))

    out2d = pl.pallas_call(
        _scale_kernel,
        out_shape=jax.ShapeDtypeStruct((rows_al, hw_al), x.dtype),
        grid_spec=pltpu.PrefetchScalarGridSpec(
            num_scalar_prefetch=0,
            grid=(grid_rows, grid_hw),
            in_specs=[
                pl.BlockSpec((row_tile, hw_tile), lambda i, j: (i, j)),
                pl.BlockSpec((row_tile, 1), lambda i, j: (i, 0)),
            ],
            out_specs=pl.BlockSpec((row_tile, hw_tile), lambda i, j: (i, j)),
        ),
        compiler_params=cparams_scale,
    )(x2d, s_col)

    if padded:
        out2d = out2d[:rows, :HW]
    return out2d.reshape(N, C, H, W)


def se_module_ref(x, w1, b1, w2, b2):
    """Pure-JAX reference matching the PyTorch forward."""
    pooled = jnp.mean(x, axis=(2, 3))                       # (N, C)
    h = jnp.maximum(pooled @ w1.T + b1, 0.0)                # (N, mid)
    s = jax.nn.sigmoid(h @ w2.T + b2)                       # (N, C)
    return x * s[:, :, None, None]


if __name__ == "__main__":
    # SEModule(channels=4, reduction=2) on input (2, 4, 16, 16)
    N, C, H, W = 2, 4, 16, 16
    reduction = 2
    mid = C // reduction

    key = jax.random.PRNGKey(0)
    kx, k1, k2, k3, k4 = jax.random.split(key, 5)
    x = jax.random.normal(kx, (N, C, H, W), dtype=jnp.float32)
    # conv1x1 weights: (out_channels, in_channels); biases deterministic.
    w1 = jax.random.normal(k1, (mid, C), dtype=jnp.float32) * 0.5
    b1 = jax.random.normal(k2, (mid,), dtype=jnp.float32) * 0.1
    w2 = jax.random.normal(k3, (C, mid), dtype=jnp.float32) * 0.5
    b2 = jax.random.normal(k4, (C,), dtype=jnp.float32) * 0.1

    out = jax.jit(se_module)(x, w1, b1, w2, b2)
    jax.block_until_ready(out)

    ref = se_module_ref(x, w1, b1, w2, b2)
    assert out.shape == (N, C, H, W)
    assert jnp.allclose(out, ref, atol=1e-5, rtol=1e-5), "mismatch vs reference"
    print("KERNEL_OK")
</pallas_src>

<mosaic_0001>
module attributes {stable_mosaic.version = 11 : i64} {
  func.func @_fused_kernel(%arg0: i32, %arg1: memref<1x4x256xf32, #tpu.memory_space<vmem>>, %arg2: memref<4x2xf32, #tpu.memory_space<vmem>>, %arg3: memref<1x2xf32, #tpu.memory_space<vmem>>, %arg4: memref<2x4xf32, #tpu.memory_space<vmem>>, %arg5: memref<1x4xf32, #tpu.memory_space<vmem>>, %arg6: memref<1x4x256xf32, #tpu.memory_space<vmem>>) attributes {dimension_semantics = [#tpu.dimension_semantics<parallel>], iteration_bounds = array<i64: 2>, scalar_prefetch = 0 : i64, scratch_operands = 0 : i64, tpu.core_type = #tpu.core_type<tc>, window_params = [{transform_indices = @transform_0, window_bounds = array<i64: 1, 4, 256>}, {pipeline_mode = #tpu.pipeline_mode<synchronous>, transform_indices = @transform_1, window_bounds = array<i64: 4, 2>}, {pipeline_mode = #tpu.pipeline_mode<synchronous>, transform_indices = @transform_2, window_bounds = array<i64: 1, 2>}, {pipeline_mode = #tpu.pipeline_mode<synchronous>, transform_indices = @transform_3, window_bounds = array<i64: 2, 4>}, {pipeline_mode = #tpu.pipeline_mode<synchronous>, transform_indices = @transform_4, window_bounds = array<i64: 1, 4>}, {transform_indices = @transform_5, window_bounds = array<i64: 1, 4, 256>}]} {
    %c0 = arith.constant 0 : index
    %c0_0 = arith.constant 0 : index
    %c0_1 = arith.constant 0 : index
    %0 = vector.load %arg1[%c0, %c0_0, %c0_1] : memref<1x4x256xf32, #tpu.memory_space<vmem>>, vector<1x4x256xf32>
    %cst = arith.constant dense<0.000000e+00> : vector<1x4xf32>
    %1 = vector.multi_reduction <add>, %0, %cst [2] : vector<1x4x256xf32> to vector<1x4xf32>
    %cst_2 = arith.constant 3.906250e-03 : f32
    %2 = vector.broadcast %cst_2 : f32 to vector<1x4xf32>
    %3 = arith.mulf %1, %2 : vector<1x4xf32>
    %c0_3 = arith.constant 0 : index
    %c0_4 = arith.constant 0 : index
    %4 = vector.load %arg2[%c0_3, %c0_4] : memref<4x2xf32, #tpu.memory_space<vmem>>, vector<4x2xf32>
    %cst_5 = arith.constant dense<0.000000e+00> : vector<1x2xf32>
    %5 = tpu.matmul %3, %4, %cst_5 {dimension_numbers = #tpu.dot_dimension_numbers<[1], [0], [0], [1], [0, 0, 1, 1], [], []>} : vector<1x4xf32>, vector<4x2xf32>, vector<1x2xf32> -> vector<1x2xf32>
    %c0_6 = arith.constant 0 : index
    %c0_7 = arith.constant 0 : index
    %6 = vector.load %arg3[%c0_6, %c0_7] : memref<1x2xf32, #tpu.memory_space<vmem>>, vector<1x2xf32>
    %7 = arith.addf %5, %6 : vector<1x2xf32>
    %cst_8 = arith.constant 0.000000e+00 : f32
    %8 = vector.broadcast %cst_8 : f32 to vector<1x2xf32>
    %9 = arith.maximumf %7, %8 : vector<1x2xf32>
    %c0_9 = arith.constant 0 : index
    %c0_10 = arith.constant 0 : index
    %10 = vector.load %arg4[%c0_9, %c0_10] : memref<2x4xf32, #tpu.memory_space<vmem>>, vector<2x4xf32>
    %cst_11 = arith.constant dense<0.000000e+00> : vector<1x4xf32>
    %11 = tpu.matmul %9, %10, %cst_11 {dimension_numbers = #tpu.dot_dimension_numbers<[1], [0], [0], [1], [0, 0, 1, 1], [], []>} : vector<1x2xf32>, vector<2x4xf32>, vector<1x4xf32> -> vector<1x4xf32>
    %c0_12 = arith.constant 0 : index
    %c0_13 = arith.constant 0 : index
    %12 = vector.load %arg5[%c0_12, %c0_13] : memref<1x4xf32, #tpu.memory_space<vmem>>, vector<1x4xf32>
    %13 = arith.addf %11, %12 : vector<1x4xf32>
    %14 = arith.negf %13 : vector<1x4xf32>
    %15 = math.exp %14 : vector<1x4xf32>
    %cst_14 = arith.constant 1.000000e+00 : f32
    %16 = vector.broadcast %cst_14 : f32 to vector<1x4xf32>
    %17 = arith.addf %16, %15 : vector<1x4xf32>
    %18 = arith.divf %16, %17 : vector<1x4xf32>
    %19 = vector.shape_cast %18 : vector<1x4xf32> to vector<1x4x1xf32>
    %20 = vector.broadcast %19 : vector<1x4x1xf32> to vector<1x4x256xf32>
    %21 = arith.mulf %0, %20 : vector<1x4x256xf32>
    %c0_15 = arith.constant 0 : index
    %c0_16 = arith.constant 0 : index
    %c0_17 = arith.constant 0 : index
    %22 = vector.load %arg6[%c0_15, %c0_16, %c0_17] : memref<1x4x256xf32, #tpu.memory_space<vmem>>, vector<1x4x256xf32>
    tpu.vector_store %arg6[%c0_15, %c0_16, %c0_17], %21 {strides = array<i32>} : memref<1x4x256xf32, #tpu.memory_space<vmem>>, vector<1x4x256xf32>,
    return
  }
  func.func @transform_0(%arg0: i32) -> (i32, i32, i32) {
    %c0_i32 = arith.constant 0 : i32
    %c0_i32_0 = arith.constant 0 : i32
    %c0_i32_1 = arith.constant 0 : i32
    return %arg0, %c0_i32, %c0_i32_0 : i32, i32, i32
  }
  func.func @transform_1(%arg0: i32) -> (i32, i32) {
    %c0_i32 = arith.constant 0 : i32
    %c0_i32_0 = arith.constant 0 : i32
    %c0_i32_1 = arith.constant 0 : i32
    return %c0_i32, %c0_i32_0 : i32, i32
  }
  func.func @transform_2(%arg0: i32) -> (i32, i32) {
    %c0_i32 = arith.constant 0 : i32
    %c0_i32_0 = arith.constant 0 : i32
    %c0_i32_1 = arith.constant 0 : i32
    return %c0_i32, %c0_i32_0 : i32, i32
  }
  func.func @transform_3(%arg0: i32) -> (i32, i32) {
    %c0_i32 = arith.constant 0 : i32
    %c0_i32_0 = arith.constant 0 : i32
    %c0_i32_1 = arith.constant 0 : i32
    return %c0_i32, %c0_i32_0 : i32, i32
  }
  func.func @transform_4(%arg0: i32) -> (i32, i32) {
    %c0_i32 = arith.constant 0 : i32
    %c0_i32_0 = arith.constant 0 : i32
    %c0_i32_1 = arith.constant 0 : i32
    return %c0_i32, %c0_i32_0 : i32, i32
  }
  func.func @transform_5(%arg0: i32) -> (i32, i32, i32) {
    %c0_i32 = arith.constant 0 : i32
    %c0_i32_0 = arith.constant 0 : i32
    %c0_i32_1 = arith.constant 0 : i32
    return %arg0, %c0_i32, %c0_i32_0 : i32, i32, i32
  }
}

</mosaic_0001>

<bundles_post_ra>
// kernel: se_module.1
= control target key start
LH: loop header
LB: loop body
LE: loop exit
PB: predicated region body
PF: predicated region fallthrough
CT: control target
= control target key end

     0   :  { %10 = vsyncpa [#allocation3], 0  ;;  %s1298_s0 = inlined_call_operand.hbm [shape: f32[2,4,256], index: 0, kind: input, shape index: {}]   ;;  %s1299_s1 = inlined_call_operand.hbm [shape: f32[4,2], index: 1, kind: input, shape index: {}]   ;;  %s1300_s2 = inlined_call_operand.hbm [shape: f32[1,2], index: 2, kind: input, shape index: {}]   ;;  %s1301_s3 = inlined_call_operand.hbm [shape: f32[2,4], index: 3, kind: input, shape index: {}]   ;;  %s1302_s4 = inlined_call_operand.hbm [shape: f32[1,4], index: 4, kind: input, shape index: {}]   ;;  %s1303_s5 = inlined_call_operand.hbm [shape: f32[2,4,256], index: 5, kind: output, shape index: {}]  }
   0x1   :  { %12 = vsyncpa [#allocation3 + $0x1], 0 }
   0x2   :  { %13 = vsyncpa [#allocation6], 0 }
   0x3   :  { %14 = vsyncpa [#allocation9], 0 }
   0x4   :  { %15 = vsyncpa [#allocation4], 0 }
   0x5   :  { %17 = vsyncpa [#allocation4 + $0x1], 0  ;;  %s1010_s18 = smov 0   ;;  %s1012_s19 = smov 0  }
   0x6   :  { %s1014_s20 = smov 0   ;;  %s1016_s21 = smov 0  }
   0x7 LB: > { %s971_s22 = smov [#allocation5]   ;;  %s1031_s24 = sadd.s32 4294967295, %s969_s21   ;;  %s969_s21 = sphi %s1016_s21, %s1327_s21   ;;  %s965_s20 = sphi %s1014_s20, %s1326_s20   ;;  %s961_s19 = sphi %s1012_s19, %s1325_s19   ;;  %s957_s18 = sphi %s1010_s18, %s1324_s18  }
   0x8   : > { %s177_s23 = sshll.u32 %s971_s22, 4  ;;  %p616_p0 = scmp.ge.s32.totalorder %s969_s21, 1  ;;  %s1036_s23 = int_to_ptr.vmem [resolvable:$true] %s177_s23 }
   0x9   : > { %p1304_p1 = scmp.eq.s32.totalorder %s1031_s24, 0  ;;  %p164_p2 = scmp.lt.s32.totalorder %s969_s21, 3 }
   0xa   : > { %s972_s26 = smov [#allocation8]   ;;  %s973_s28 = smov [#allocation7]  }
   0xb   : > { %p1038_p3 = pnand %p616_p0, %p164_p2  ;;  %s199_s27 = sshll.u32 %s972_s26, 4  ;;  %s1045_s27 = int_to_ptr.vmem [resolvable:$true] %s199_s27 }
   0xc   : > { %s188_s29 = sshll.u32 %s973_s28, 4  ;;  %s974_s6 = smov [#allocation10]   ;;  %s1053_s29 = int_to_ptr.vmem [resolvable:$true] %s188_s29 }
   0xd   : > { %s1307_s25 = scalar_select %p1038_p3, 1, 0 }
   0xe   : > { %p678_p5 = pneg %p1038_p3  ;;  %s1055_s7 = sshll.u32 %s974_s6, 4  ;;  %s211_s7 = int_to_ptr.vmem [resolvable:$true] %s1055_s7 }
   0xf   : > { %s753_s10 = scalar_lea.hbm %s1299_s1, 64 }
  0x10   : > { %p1049_p6 = pnand %p678_p5, %p1304_p1  ;;  %p754_p7 = scmp.ne.s32.totalorder %s1299_s1, %s753_s10 }
  0x11   : > { %p760_p11 = scmp.lt.u32.totalorder %s753_s10, %s1299_s1 }
  0x12   : > { %p1065_p8 = pneg %p1049_p6 }
  0x14   : > { %p756_p9 = pnand %p1065_p8, %p754_p7 }
  0x16   : > { %p757_p10 = pneg %p756_p9 }
  0x18   : > { %p762_p12 = pnand %p760_p11, %p757_p10 }
  0x1a   : > { %765 = shalt.err (!%p762_p12)
}
  0x1b   : > { %s766_s16 = scalar_lea.vmem %s1036_s23, 64  ;;  %p774_p5 = scmp.lt.s32.totalorder %s1036_s23, %s1036_s23 }
  0x1c   : > { %p767_p13 = scmp.ne.s32.totalorder %s1036_s23, %s766_s16  ;;  %p775_p4 = scmp.lt.s32.totalorder %s766_s16, %s766_s16 }
  0x1e   : > { %p769_p0 = pnand %p767_p13, %p1065_p8  ;;  %p776_p7 = por %p775_p4, %p774_p5 }
  0x20   : > { %p770_p2 = pneg %p769_p0 }
  0x22   : > { %p777_p9 = pnand %p776_p7, %p770_p2 }
  0x24   : > { %780 = shalt.err (!%p777_p9)
}
  0x25   : > { %681 = dma.hbm_to_vmem [thread:$0]  (!%p1049_p6), %s1299_s1, 64, %s1036_s23, [#allocation6]  }
  0x26   : > { %s781_s6 = scalar_lea.hbm %s1301_s3, 32 }
  0x27   : > { %p782_p10 = scmp.ne.s32.totalorder %s1301_s3, %s781_s6  ;;  %p788_p12 = scmp.lt.u32.totalorder %s781_s6, %s1301_s3 }
  0x29   : > { %p784_p4 = pnand %p782_p10, %p1065_p8 }
  0x2b   : > { %p785_p11 = pneg %p784_p4 }
  0x2d   : > { %p790_p13 = pnand %p788_p12, %p785_p11 }
  0x2f   : > { %793 = shalt.err (!%p790_p13)
}
  0x30   : > { %s794_s23 = scalar_lea.vmem %s1045_s27, 32  ;;  %p802_p7 = scmp.lt.s32.totalorder %s1045_s27, %s1045_s27 }
  0x31   : > { %p795_p0 = scmp.ne.s32.totalorder %s1045_s27, %s794_s23  ;;  %p803_p9 = scmp.lt.s32.totalorder %s794_s23, %s794_s23 }
  0x33   : > { %p797_p2 = pnand %p795_p0, %p1065_p8  ;;  %p804_p10 = por %p803_p9, %p802_p7 }
  0x35   : > { %p798_p5 = pneg %p797_p2 }
  0x37   : > { %p805_p4 = pnand %p804_p10, %p798_p5 }
  0x39   : > { %808 = shalt.err (!%p805_p4)
}
  0x3a   : > { %687 = dma.hbm_to_vmem [thread:$0]  (!%p1049_p6), %s1301_s3, 32, %s1045_s27, [#allocation9]  }
  0x3b   : > { %s809_s17 = scalar_lea.hbm %s1300_s2, 16 }
  0x3c   : > { %p810_p11 = scmp.ne.s32.totalorder %s1300_s2, %s809_s17  ;;  %p816_p0 = scmp.lt.u32.totalorder %s809_s17, %s1300_s2 }
  0x3e   : > { %p812_p12 = pnand %p810_p11, %p1065_p8 }
  0x40   : > { %p813_p13 = pneg %p812_p12 }
  0x42   : > { %p818_p2 = pnand %p816_p0, %p813_p13 }
  0x44   : > { %821 = shalt.err (!%p818_p2)
}
  0x45   : > { %s822_s27 = scalar_lea.vmem %s1053_s29, 16  ;;  %s829_s8 = scalar_lea.vmem %s1053_s29, 32 }
  0x46   : > { %p823_p5 = scmp.ne.s32.totalorder %s1053_s29, %s822_s27  ;;  %p830_p10 = scmp.lt.s32.totalorder %s1053_s29, %s1053_s29 }
  0x47   : > { %p831_p4 = scmp.lt.s32.totalorder %s829_s8, %s822_s27 }
  0x48   : > { %p825_p7 = pnand %p823_p5, %p1065_p8 }
  0x49   : > { %p832_p11 = por %p831_p4, %p830_p10 }
  0x4a   : > { %p826_p9 = pneg %p825_p7 }
  0x4c   : > { %p833_p12 = pnand %p832_p11, %p826_p9 }
  0x4e   : > { %836 = shalt.err (!%p833_p12)
}
  0x4f   : > { %684 = dma.hbm_to_vmem [thread:$0]  (!%p1049_p6), %s1300_s2, 16, %s1053_s29, [#allocation6]  }
  0x50   : > { %s837_s12 = scalar_lea.hbm %s1302_s4, 16 }
  0x51   : > { %p838_p13 = scmp.ne.s32.totalorder %s1302_s4, %s837_s12  ;;  %p844_p5 = scmp.lt.u32.totalorder %s837_s12, %s1302_s4 }
  0x53   : > { %p840_p0 = pnand %p838_p13, %p1065_p8 }
  0x55   : > { %p841_p2 = pneg %p840_p0 }
  0x57   : > { %p846_p7 = pnand %p844_p5, %p841_p2 }
  0x59   : > { %849 = shalt.err (!%p846_p7)
}
  0x5a   : > { %s850_s22 = scalar_lea.vmem %s211_s7, 16  ;;  %s857_s29 = scalar_lea.vmem %s211_s7, 32 }
  0x5b   : > { %p851_p9 = scmp.ne.s32.totalorder %s211_s7, %s850_s22  ;;  %p858_p11 = scmp.lt.s32.totalorder %s211_s7, %s211_s7 }
  0x5c   : > { %p859_p12 = scmp.lt.s32.totalorder %s857_s29, %s850_s22 }
  0x5d   : > { %p853_p10 = pnand %p851_p9, %p1065_p8 }
  0x5e   : > { %p860_p1 = por %p859_p12, %p858_p11 }
  0x5f   : > { %p854_p4 = pneg %p853_p10 }
  0x61   : > { %p861_p3 = pnand %p860_p1, %p854_p4 }
  0x63   : > { %864 = shalt.err (!%p861_p3)
}
  0x64   : > { %690 = dma.hbm_to_vmem [thread:$0]  (!%p1049_p6), %s1302_s4, 16, %s211_s7, [#allocation9]  }
  0x65   : > { %s615_s13 = sadd.s32 4294967294, %s969_s21   ;;  %s1154_s30 = sadd.s32 1, %s969_s21  }
  0x66   : > { %s27_s6 = ssub.s32 %s969_s21, %s1154_s30  ;;  %s30_s27 = sadd.s32 1, %s965_s20 }
  0x67   : > { %p28_p1 = scmp.eq.s32.totalorder %s27_s6, 0  ;;  %p37_p3 = scmp.ne.s32.totalorder %s965_s20, %s961_s19 }
  0x68   : > { %p38_p8 = scmp.eq.s32.totalorder %s969_s21, 0  ;;  %p43_p13 = scmp.ne.s32.totalorder %s961_s19, %s957_s18 }
  0x69   : > { %s1165_s8 = scalar_select %p28_p1, %s965_s20, %s30_s27  }
  0x6a   : > { %p1167_p0 = por %p38_p8, %p37_p3  ;;  %p1311_p2 = scmp.eq.s32.totalorder %s1031_s24, 0 }
  0x6b   : > { %p151_p5 = scmp.eq.s32.totalorder %s1031_s24, 1  ;;  %p157_p7 = scmp.eq.s32.totalorder %s615_s13, 1 }
  0x6c   : > { %p1173_p6 = por %p1311_p2, %p43_p13  ;;  %p703_p9 = scmp.lt.s32.totalorder %s969_s21, 2 }
  0x6d   : > { %s221_s10 = sand.u32 1, %s965_s20   ;;  %p1180_p10 = por %p151_p5, %p37_p3 }
  0x6e   : > { %p1184_p4 = por %p157_p7, %p43_p13  ;;  %s622_s12 = sshll.u32 %s221_s10, 3 }
  0x6f   : > { %s1313_s11 = scalar_select %p1180_p10, 1, 0 }
  0x70   : > { %s1314_s23 = scalar_select %p1184_p4, 1, 0 }
  0x71   : > { %s642_s14 = sshll.u32 %s969_s21, 7  ;;  %s225_s22 = scalar_lea.vmem [#allocation2], %s622_s12 }
  0x72   : > { %s1192_s17 = scalar_lea.hbm %s1298_s0, %s642_s14  ;;  %s233_s29 = sshll.u32 %s225_s22, 4  ;;  %s1194_s29 = int_to_ptr.vmem [resolvable:$true] %s233_s29 }
  0x73   : > { %p1198_p11 = pnand %p703_p9, %p1167_p0  ;;  %s222_s28 = scalar_lea.sflag [#allocation3], %s221_s10 }
  0x74   : > { %s865_s13 = scalar_lea.hbm %s1192_s17, 128  ;;  %s870_s12 = scalar_lea.hbm %s1298_s0, 256 }
  0x75   : > { %p866_p12 = scmp.ne.s32.totalorder %s1192_s17, %s865_s13  ;;  %p867_p1 = pneg %p1198_p11 }
  0x76   : > { %p871_p13 = scmp.lt.u32.totalorder %s1192_s17, %s1298_s0  ;;  %p872_p0 = scmp.lt.u32.totalorder %s870_s12, %s865_s13 }
  0x77   : > { %p868_p3 = pnand %p867_p1, %p866_p12  ;;  %p874_p5 = scmp.lt.u32.totalorder %s865_s13, %s1192_s17 }
  0x78   : > { %p873_p2 = por %p872_p0, %p871_p13 }
  0x79   : > { %p869_p8 = pneg %p868_p3 }
  0x7a   : > { %p875_p7 = por %p874_p5, %p873_p2 }
  0x7c   : > { %p876_p9 = pnand %p875_p7, %p869_p8 }
  0x7e   : > { %879 = shalt.err (!%p876_p9)
}
  0x7f   : > { %s880_s10 = scalar_lea.vmem %s1194_s29, 128  ;;  %s975_s15 = smov [#allocation2]  }
  0x80   : > { %p881_p12 = scmp.ne.s32.totalorder %s1194_s29, %s880_s10  ;;  %s885_s16 = sshll.u32 %s975_s15, 4  ;;  %s886_s16 = int_to_ptr.vmem [resolvable:$false] %s885_s16 }
  0x81   : > { %s887_s22 = scalar_lea.vmem %s886_s16, 256  ;;  %p888_p10 = scmp.lt.s32.totalorder %s1194_s29, %s886_s16 }
  0x82   : > { %p883_p3 = pnand %p881_p12, %p867_p1  ;;  %p889_p13 = scmp.lt.s32.totalorder %s887_s22, %s880_s10 }
  0x84   : > { %p884_p4 = pneg %p883_p3  ;;  %p890_p0 = por %p889_p13, %p888_p10 }
  0x86   : > { %p891_p2 = pnand %p890_p0, %p884_p4 }
  0x88   : > { %894 = shalt.err (!%p891_p2)
}
  0x89   : > { %694 = dma.hbm_to_vmem [thread:$0]  (!%p1198_p11), %s1192_s17, 128, %s1194_s29, %s222_s28  }
  0x8a   : > { %p1316_p8 = scmp.ne.s32.totalorder %s1307_s25, 0 }
  0x8b   : > { %s1230_s13 = sand.u32 (!%p1316_p8), 1, %s961_s19  }
  0x8c   : > { %242 = sbr.rel (%p1316_p8) target bundleno = 898 (0x382), region = 40  ;;  %s626_s6 = sshll.u32 (!%p1316_p8), %s1230_s13, 3 }
  0x8d   : > { %s245_s27 = scalar_lea.sflag (!%p1316_p8), [#allocation3], %s1230_s13  ;;  %s248_s12 = scalar_lea.vmem (!%p1316_p8), [#allocation2], %s626_s6 }
  0x93   : > { %940 = dma.done.wait (%p1173_p6), %s245_s27, 128  }
  0x94   : > { %942 = vsyncadd (%p1173_p6), %s245_s27, 4294967168  ;;  %p1317_p10 = scmp.eq.s32.totalorder %s1031_s24, 0 }
  0x96   : > { %944 = dma.done.wait (%p1317_p10), [#allocation6], 80   ;;  %p1318_p4 = pmov %p1317_p10 }
  0x98   : > { %946 = vsyncadd (%p1318_p4), [#allocation6], 4294967216  ;;  %p1319_p11 = pmov %p1318_p4 }
  0x99   : > { %p1320_p1 = pmov %p1318_p4 }
  0x9a   : > { %948 = dma.done.wait (%p1319_p11), [#allocation9], 48  }
  0x9b   : > { %950 = vsyncadd (%p1320_p1), [#allocation9], 4294967248  ;;  %vm295_vm0 = vcmask 1043456   ;;  %v291_v0 = vld [vmem:[%s248_s12] sm:$0xff]  ;;  %v976_v5 = vmov 0.0   ;;  %vm977_vm1 = vmmov 0   ;;  %v305_v7 = vlaneseq }
  0x9c   : > { %v293_v1 = vcombine.high %v291_v0, %v291_v0  ;;  %v296_v2 = vsel %vm295_vm0, %v291_v0, 0.0  ;;  %648 = vmatprep.subr.mxu0 %v976_v5  ;;  %v302_v6 = vld [vmem:[#allocation5] sm:$0xf]  ;;  %653 = vmatprep.subr.mxu1 %v976_v5  ;;  %vm311_vm2 = vcmask 31744   ;;  %v388_v14 = vld [vmem:[#allocation8] sm:$0x3] }
  0x9d   : > { %649 = vmatpush3.msk.msra.mxu0 %vm295_vm0, %v302_v6  ;;  %650 = vmatprep.mubr.msk.f32.mxu0 %vm977_vm1, %v976_v5  ;;  %v306_v8 = vand.u32 127, %v305_v7  ;;  %v308_v9 = vshrl.u32 %v305_v7, 7  ;;  %vm394_vm3 = vcmask 1041408   ;;  %v303_v15 = vld [vmem:[#allocation7] sm:$0x1]  ;;  %vm390_vm4 = vcmask 15360  }
  0x9e   : > { %v297_v3 = vsel %vm295_vm0, %v293_v1, 0.0  ;;  %655 = vmatprep.mubr.msk.f32.mxu1 %vm977_vm1, %v976_v5  ;;  %654 = vmatpush3.msk.msra.mxu1 %vm394_vm3, %v388_v14  ;;  %v389_v20 = vld [vmem:[#allocation10] sm:$0x1]  ;;  %v978_v30 = vmov 839922192   ;;  %s643_s25 = sshll.u32 %s1031_s24, 7 }
  0x9f   : > { %v298_v4 = vadd.f32 %v297_v3, %v296_v2  ;;  %v309_v10 = vsub.s32 %v306_v8, %v308_v9  ;;  %v476_v27 = vsub.s32 0, %v308_v9  ;;  %v483_v31 = vunpack.c.l.s4 %v978_v30  ;;  %s290_s7 = scalar_lea.vmem [#allocation11], %s626_s6  ;;  %s1254_s28 = scalar_lea.hbm %s1303_s5, %s643_s25 }
  0xa0   : > { %s507_s17 = sshll.u32 %s290_s7, 4  ;;  %s493_s9 = scalar_lea.sflag [#allocation4], %s1230_s13  ;;  %s1256_s17 = int_to_ptr.vmem [resolvable:$true] %s507_s17 }
  0xa1   : > { %299 = vadd.xlane.f32.xlu0 %v298_v4  ;;  %v484_v32 = vunpack.c.0.s8 %v483_v31  ;;  %s895_s14 = scalar_lea.vmem %s1256_s17, 128  ;;  %p1321_p5 = scmp.ne.s32.totalorder %s1313_s11, 0 }
  0xa2   : > { %p896_p6 = scmp.ne.s32.totalorder %s1256_s17, %s895_s14  ;;  %s979_s24 = smov [#allocation11]  }
  0xa3   : > { %v487_v33 = vsub.s32 %v484_v32, %v308_v9  ;;  %s899_s10 = sshll.u32 %s979_s24, 4  ;;  %s900_s10 = int_to_ptr.vmem [resolvable:$false] %s899_s10 }
  0xa4   : > { %p897_p7 = pnand %p896_p6, %p1321_p5  ;;  %s901_s15 = scalar_lea.vmem %s900_s10, 256 }
  0xa5   : > { %p902_p12 = scmp.lt.s32.totalorder %s1256_s17, %s900_s10  ;;  %p903_p3 = scmp.lt.s32.totalorder %s901_s15, %s895_s14 }
  0xa6   : > { %p898_p9 = pneg %p897_p7 }
  0xa7   : > { %p904_p13 = por %p903_p3, %p902_p12 }
  0xa9   : > { %p905_p0 = pnand %p904_p13, %p898_p9 }
 0x12e   : > { %v300_v11 = vpop.xlane.xlu0 %299 }
 0x12f   : > { %v301_v12 = vmul.f32 0.00390625, %v300_v11 }
 0x131   : > { %v310_v13 = vrot.slane %v301_v12, %v309_v10 }
 0x133   : > { %651 = vmatmul.mubr.msk.f32.vlgmr.msra.gmra.mrb[0].mxu0 %vm311_vm2, %v310_v13 }
 0x206   : > { %v383_v16 = vpop.f32.mrb[0].mxu0 }
 0x207   : > { %v384_v17 = vadd.f32 %v383_v16, %v303_v15  ;;  %v652_v18 = vpop.f32.mrb[1].mxu0 }
 0x209   : > { %v387_v19 = vmax.f32 %v384_v17, 0.0 }
 0x20b   : > { %656 = vmatmul.mubr.msk.f32.vlgmr.msra.gmra.mrb[0].mxu1 %vm390_vm4, %v387_v19 }
 0x2de   : > { %v464_v21 = vpop.f32.mrb[0].mxu1 }
 0x2df   : > { %v465_v22 = vadd.f32 %v464_v21, %v389_v20  ;;  %v657_v23 = vpop.f32.mrb[1].mxu1 }
 0x2e1   : > { %v636_v24 = vmul.f32 -1.442695, %v465_v22 }
 0x2e3   : > { %749 = vpow2.f32 %v636_v24 }
 0x2ed   : > { %v750_v25 = vpop.eup %749 }
 0x2ee   : > { %v471_v26 = vadd.f32 1.0, %v750_v25 }
 0x2f0   : > { %751 = vrcp.f32 %v471_v26 }
 0x2fa   : > { %v752_v28 = vpop.eup %751 }
 0x2fb   : > { %v477_v29 = vrot.slane %v752_v28, %v476_v27 }
 0x2fd   : > { %479 = vbcast.lane.b32.xlu0 %v477_v29, 256 }
 0x36f   : > { %v480_v34 = vpop.permute.xlu0 %479 }
 0x370   : > { %v488_v35 = vrot.slane %v480_v34, %v487_v33 }
 0x372   : > { %v490_v36 = vmul.f32 %v488_v35, %v291_v0 }
 0x374   : > { %491 = vst [vmem:[%s290_s7] sm:$0xff] %v490_v36 }
 0x375   : > { %908 = shalt.err (!%p905_p0)
}
 0x376   : > { %s909_s16 = scalar_lea.hbm %s1254_s28, 128  ;;  %s913_s6 = scalar_lea.hbm %s1303_s5, 256 }
 0x377   : > { %p910_p2 = scmp.ne.s32.totalorder %s1254_s28, %s909_s16  ;;  %p914_p4 = scmp.lt.u32.totalorder %s1254_s28, %s1303_s5 }
 0x378   : > { %p915_p11 = scmp.lt.u32.totalorder %s913_s6, %s909_s16  ;;  %p917_p6 = scmp.lt.u32.totalorder %s909_s16, %s1254_s28 }
 0x379   : > { %p911_p8 = pnand %p910_p2, %p1321_p5 }
 0x37a   : > { %p916_p1 = por %p915_p11, %p914_p4 }
 0x37b   : > { %p912_p10 = pneg %p911_p8 }
 0x37c   : > { %p918_p7 = por %p917_p6, %p916_p1 }
 0x37e   : > { %p919_p9 = pnand %p918_p7, %p912_p10 }
 0x380   : > { %922 = shalt.err (!%p919_p9)
}
 0x381   : > { %676 = dma.vmem_to_hbm [thread:$0]  (%p1321_p5), %s1256_s17, 128, %s1254_s28, %s493_s9  }
 0x382 PF: > { %s519_s25 = sand.u32 1, %s957_s18   ;;  %p1322_p12 = scmp.ne.s32.totalorder %s1314_s23, 0 }
 0x383   : > { %p1323_p3 = scmp.ge.s32.totalorder %s969_s21, 2  ;;  %s520_s7 = scalar_lea.sflag [#allocation4], %s519_s25 }
 0x385   : > { %p696_p13 = pnand %p1323_p3, %p1322_p12 }
 0x387   : > { %952 = dma.done.wait (!%p696_p13), %s520_s7, 128  }
 0x388   : > { %954 = vsyncadd (!%p696_p13), %s520_s7, 4294967168  ;;  %p20_p0 = scmp.ge.s32.totalorder %s1154_s30, 4   ;;  %s1324_s18 = smov %s961_s19 }
 0x389   : > { %s1325_s19 = smov %s965_s20  ;;  %s1326_s20 = smov %s1165_s8 }
 0x38a   : > { %s1327_s21 = smov %s1154_s30  ;;  %22 = sbr.rel (!%p20_p0) target bundleno = 7 (0x7), region = 101 }
 0x391   :  { %525 = vsyncpa [#allocation3], 1 }
 0x392   :  { %527 = vsyncpa [#allocation3 + $0x1], 1 }
 0x393   :  { %528 = vsyncpa [#allocation6], 1 }
 0x394   :  { %529 = vsyncpa [#allocation9], 1 }
 0x395   :  { %530 = vsyncpa [#allocation4], 1 }
 0x396   :  { %532 = vsyncpa [#allocation4 + $0x1], 1 }

</bundles_post_ra>
